<compile_context>
chip_gen: v7x
topology: tpu7x:2x2x1
jax: 0.10.0
libtpu: 0.0.40
codegen_flags: <defaults>
</compile_context>

<pallas_src>
import jax
import jax.numpy as jnp
from jax.experimental import pallas as pl
from jax.experimental.pallas import tpu as pltpu

HIDDEN = 256          # hidden width of each Q head
SA_PAD = 128          # padded (state+action) input width (lane-dense)
OUT_PAD = 128         # packed output width holding BOTH heads
Q2_COL_OFFSET = 64    # q2 columns start here inside the packed output
MAX_BATCH_TILE = 512  # upper bound on rows per grid step


def _critic_kernel(sa_ref, w1_ref, b1_ref, w2_ref, b2_ref, w3_ref, b3_ref,
                   out_ref):
    # Layer 1: both heads stacked along N (N = 2*HIDDEN = 512), K = 128.
    h1 = jnp.dot(sa_ref[...], w1_ref[...], preferred_element_type=jnp.float32)
    h1 = jnp.maximum(h1 + b1_ref[...], 0.0).astype(jnp.bfloat16)

    # Layer 2: one block-diagonal (512, 512) matmul covering both heads.
    h2 = jnp.dot(h1, w2_ref[...], preferred_element_type=jnp.float32)
    h2 = jnp.maximum(h2 + b2_ref[...], 0.0).astype(jnp.bfloat16)

    # Layer 3: one (512, 128) matmul; q1 -> cols [0:A], q2 -> cols [64:64+A]
    # (column placement baked into w3/b3).  Single 128-lane unmasked store.
    out_ref[...] = (
        jnp.dot(h2, w3_ref[...], preferred_element_type=jnp.float32)
        + b3_ref[...])


def _choose_tiling(batch):
    """Pad batch to a multiple of 64; pick the largest tile that still gives
    >= 2 grid steps (v7x has 2 TensorCores) without exceeding MAX_BATCH_TILE."""
    pb = ((batch + 63) // 64) * 64
    for tb in (MAX_BATCH_TILE, 256, 128, 64):
        if tb <= pb // 2 and pb % tb == 0:
            return pb, tb
    return pb, pb  # tiny batch: single tile, no extra padding


def critic_forward(params, state, action):
    """Fused twin-critic forward.  Returns (q1, q2), each (batch, action_dim) f32."""
    w1, b1, w2, b2, w3, b3 = params
    B, state_dim = state.shape
    action_dim = action.shape[1]
    sa_dim = state_dim + action_dim
    assert sa_dim <= SA_PAD, "state_dim + action_dim must fit in 128 lanes"
    assert action_dim <= Q2_COL_OFFSET, "action_dim must fit in 64 packed lanes"

    PB, TB = _choose_tiling(B)
    num_steps = PB // TB

    # Lane-dense packed (state | action) input, zero-padded to 128 lanes, bf16.
    sa = jnp.zeros((PB, SA_PAD), jnp.bfloat16)
    sa = sa.at[:B, :state_dim].set(state.astype(jnp.bfloat16))
    sa = sa.at[:B, state_dim:sa_dim].set(action.astype(jnp.bfloat16))

    batch_map = lambda i: (i, 0)   # activations: tiled over the batch grid axis
    full_map = lambda i: (0, 0)    # weights/biases: same block every step

    if num_steps >= 3:
        # Deeper output buffering hides tile i-1's f32 writeback (the dominant
        # DMA stream) behind tile i's short compute.
        out_spec = pl.BlockSpec((TB, OUT_PAD), batch_map,
                                pipeline_mode=pl.Buffered(3))
    else:
        out_spec = pl.BlockSpec((TB, OUT_PAD), batch_map)

    out = pl.pallas_call(
        _critic_kernel,
        out_shape=jax.ShapeDtypeStruct((PB, OUT_PAD), jnp.float32),
        grid=(num_steps,),
        in_specs=[
            pl.BlockSpec((TB, SA_PAD), batch_map),
            pl.BlockSpec((SA_PAD, 2 * HIDDEN), full_map),
            pl.BlockSpec((1, 2 * HIDDEN), full_map),
            pl.BlockSpec((2 * HIDDEN, 2 * HIDDEN), full_map),
            pl.BlockSpec((1, 2 * HIDDEN), full_map),
            pl.BlockSpec((2 * HIDDEN, OUT_PAD), full_map),
            pl.BlockSpec((1, OUT_PAD), full_map),
        ],
        out_specs=out_spec,
        compiler_params=pltpu.CompilerParams(
            dimension_semantics=("parallel",)),
    )(sa, w1, b1, w2, b2, w3, b3)

    q1 = out[:B, :action_dim]
    q2 = out[:B, Q2_COL_OFFSET:Q2_COL_OFFSET + action_dim]
    return q1, q2


def critic_q1(params, state, action):
    """Q1-only path (actor loss).  The fused kernel still evaluates Q2 (free:
    weights are VMEM-resident and the output tile is shared); only Q1 returned."""
    return critic_forward(params, state, action)[0]


# ----------------------------- parameter helpers -----------------------------

def init_raw_params(key, state_dim, action_dim):
    """Per-head parameters in (in, out) layout (transpose of torch Linear.weight).
    PyTorch init uses zero biases; small random biases are used here so the
    bias-add path is actually exercised by the correctness check."""
    def xavier_relu(k, fan_in, fan_out):
        std = jnp.sqrt(2.0) * jnp.sqrt(2.0 / (fan_in + fan_out))  # gain('relu')
        return (std * jax.random.normal(k, (fan_in, fan_out))).astype(jnp.float32)

    ks = iter(jax.random.split(key, 12))
    sa = state_dim + action_dim
    raw = {}
    for head in ("q1", "q2"):
        raw[head] = dict(
            w1=xavier_relu(next(ks), sa, HIDDEN),
            b1=0.05 * jax.random.normal(next(ks), (HIDDEN,), jnp.float32),
            w2=xavier_relu(next(ks), HIDDEN, HIDDEN),
            b2=0.05 * jax.random.normal(next(ks), (HIDDEN,), jnp.float32),
            w3=xavier_relu(next(ks), HIDDEN, action_dim),
            b3=0.05 * jax.random.normal(next(ks), (action_dim,), jnp.float32),
        )
    return raw


def pack_params(raw, state_dim, action_dim):
    """Pack both heads into the kernel's fused / block-diagonal / padded layout."""
    q1, q2 = raw["q1"], raw["q2"]
    sa = state_dim + action_dim
    assert sa <= SA_PAD and action_dim <= Q2_COL_OFFSET

    # Layer 1: (128, 512).  Rows [0:sa] hold both heads' layer-1 weights
    # (heads stacked along N); padded input rows hit zero weight rows.
    w1 = jnp.zeros((SA_PAD, 2 * HIDDEN), jnp.float32)
    w1 = w1.at[:sa, :HIDDEN].set(q1["w1"])
    w1 = w1.at[:sa, HIDDEN:].set(q2["w1"])
    b1 = jnp.concatenate([q1["b1"], q2["b1"]])[None, :]

    # Layer 2: block-diagonal (512, 512) so one matmul covers both heads.
    w2 = jnp.zeros((2 * HIDDEN, 2 * HIDDEN), jnp.float32)
    w2 = w2.at[:HIDDEN, :HIDDEN].set(q1["w2"])
    w2 = w2.at[HIDDEN:, HIDDEN:].set(q2["w2"])
    b2 = jnp.concatenate([q1["b2"], q2["b2"]])[None, :]

    # Layer 3: (512, 128).  q1 -> output cols [0:A]; q2 -> cols [64:64+A].
    w3 = jnp.zeros((2 * HIDDEN, OUT_PAD), jnp.float32)
    w3 = w3.at[:HIDDEN, :action_dim].set(q1["w3"])
    w3 = w3.at[HIDDEN:, Q2_COL_OFFSET:Q2_COL_OFFSET + action_dim].set(q2["w3"])
    b3 = jnp.zeros((1, OUT_PAD), jnp.float32)
    b3 = b3.at[0, :action_dim].set(q1["b3"])
    b3 = b3.at[0, Q2_COL_OFFSET:Q2_COL_OFFSET + action_dim].set(q2["b3"])

    # Matmul operands in bf16 (f32 accumulation in-kernel); biases stay f32.
    bf = lambda x: x.astype(jnp.bfloat16)
    return (bf(w1), b1, bf(w2), b2, bf(w3), b3)


def reference_forward(raw, state, action):
    """Pure-JAX f32 equivalent of the PyTorch Critic.forward."""
    sa = jnp.concatenate([state, action], axis=1)
    def head(p):
        h1 = jax.nn.relu(sa @ p["w1"] + p["b1"])
        h2 = jax.nn.relu(h1 @ p["w2"] + p["b2"])
        return h2 @ p["w3"] + p["b3"]
    return head(raw["q1"]), head(raw["q2"])


if __name__ == "__main__":
    key = jax.random.PRNGKey(0)
    k_param, k_state, k_action = jax.random.split(key, 3)

    state_dim, action_dim, batch = 17, 6, 64
    raw = init_raw_params(k_param, state_dim, action_dim)
    params = pack_params(raw, state_dim, action_dim)

    state = jax.random.uniform(k_state, (batch, state_dim), jnp.float32, -1.0, 1.0)
    action = jax.random.uniform(k_action, (batch, action_dim), jnp.float32, -1.0, 1.0)

    q1, q2 = jax.jit(critic_forward)(params, state, action)
    jax.block_until_ready((q1, q2))

    # Correctness vs. f32 reference (kernel path is bf16 w/ f32 accumulation).
    r1, r2 = reference_forward(raw, state, action)
    assert q1.shape == (batch, action_dim) and q2.shape == (batch, action_dim)
    assert jnp.allclose(q1, r1, atol=5e-2, rtol=5e-2), float(jnp.max(jnp.abs(q1 - r1)))
    assert jnp.allclose(q2, r2, atol=5e-2, rtol=5e-2), float(jnp.max(jnp.abs(q2 - r2)))

    # Q1-only path (actor loss) must agree with the twin forward.
    q1_only = jax.jit(critic_q1)(params, state, action)
    jax.block_until_ready(q1_only)
    assert jnp.allclose(q1_only, q1)

    print("KERNEL_OK")
</pallas_src>

<mosaic_0001>
module attributes {stable_mosaic.version = 11 : i64} {
  func.func @_critic_kernel(%arg0: i32, %arg1: memref<64x128xbf16, #tpu.memory_space<vmem>>, %arg2: memref<128x512xbf16, #tpu.memory_space<vmem>>, %arg3: memref<1x512xf32, #tpu.memory_space<vmem>>, %arg4: memref<512x512xbf16, #tpu.memory_space<vmem>>, %arg5: memref<1x512xf32, #tpu.memory_space<vmem>>, %arg6: memref<512x128xbf16, #tpu.memory_space<vmem>>, %arg7: memref<1x128xf32, #tpu.memory_space<vmem>>, %arg8: memref<64x128xf32, #tpu.memory_space<vmem>>) attributes {dimension_semantics = [#tpu.dimension_semantics<parallel>], iteration_bounds = array<i64: 1>, scalar_prefetch = 0 : i64, scratch_operands = 0 : i64, tpu.core_type = #tpu.core_type<tc>, window_params = [{transform_indices = @transform_0, window_bounds = array<i64: 64, 128>}, {pipeline_mode = #tpu.pipeline_mode<synchronous>, transform_indices = @transform_1, window_bounds = array<i64: 128, 512>}, {pipeline_mode = #tpu.pipeline_mode<synchronous>, transform_indices = @transform_2, window_bounds = array<i64: 1, 512>}, {pipeline_mode = #tpu.pipeline_mode<synchronous>, transform_indices = @transform_3, window_bounds = array<i64: 512, 512>}, {pipeline_mode = #tpu.pipeline_mode<synchronous>, transform_indices = @transform_4, window_bounds = array<i64: 1, 512>}, {pipeline_mode = #tpu.pipeline_mode<synchronous>, transform_indices = @transform_5, window_bounds = array<i64: 512, 128>}, {pipeline_mode = #tpu.pipeline_mode<synchronous>, transform_indices = @transform_6, window_bounds = array<i64: 1, 128>}, {transform_indices = @transform_7, window_bounds = array<i64: 64, 128>}]} {
    %c0 = arith.constant 0 : index
    %c0_0 = arith.constant 0 : index
    %0 = vector.load %arg1[%c0, %c0_0] : memref<64x128xbf16, #tpu.memory_space<vmem>>, vector<64x128xbf16>
    %c0_1 = arith.constant 0 : index
    %c0_2 = arith.constant 0 : index
    %1 = vector.load %arg2[%c0_1, %c0_2] : memref<128x512xbf16, #tpu.memory_space<vmem>>, vector<128x512xbf16>
    %cst = arith.constant dense<0.000000e+00> : vector<64x512xf32>
    %2 = tpu.matmul %0, %1, %cst {dimension_numbers = #tpu.dot_dimension_numbers<[1], [0], [0], [1], [0, 0, 1, 1], [], []>} : vector<64x128xbf16>, vector<128x512xbf16>, vector<64x512xf32> -> vector<64x512xf32>
    %c0_3 = arith.constant 0 : index
    %c0_4 = arith.constant 0 : index
    %3 = vector.load %arg3[%c0_3, %c0_4] : memref<1x512xf32, #tpu.memory_space<vmem>>, vector<1x512xf32>
    %4 = vector.broadcast %3 : vector<1x512xf32> to vector<64x512xf32>
    %5 = arith.addf %2, %4 : vector<64x512xf32>
    %cst_5 = arith.constant 0.000000e+00 : f32
    %6 = vector.broadcast %cst_5 : f32 to vector<64x512xf32>
    %7 = arith.maximumf %5, %6 : vector<64x512xf32>
    %8 = arith.truncf %7 : vector<64x512xf32> to vector<64x512xbf16>
    %c0_6 = arith.constant 0 : index
    %c0_7 = arith.constant 0 : index
    %9 = vector.load %arg4[%c0_6, %c0_7] : memref<512x512xbf16, #tpu.memory_space<vmem>>, vector<512x512xbf16>
    %cst_8 = arith.constant dense<0.000000e+00> : vector<64x512xf32>
    %10 = tpu.matmul %8, %9, %cst_8 {dimension_numbers = #tpu.dot_dimension_numbers<[1], [0], [0], [1], [0, 0, 1, 1], [], []>} : vector<64x512xbf16>, vector<512x512xbf16>, vector<64x512xf32> -> vector<64x512xf32>
    %c0_9 = arith.constant 0 : index
    %c0_10 = arith.constant 0 : index
    %11 = vector.load %arg5[%c0_9, %c0_10] : memref<1x512xf32, #tpu.memory_space<vmem>>, vector<1x512xf32>
    %12 = vector.broadcast %11 : vector<1x512xf32> to vector<64x512xf32>
    %13 = arith.addf %10, %12 : vector<64x512xf32>
    %cst_11 = arith.constant 0.000000e+00 : f32
    %14 = vector.broadcast %cst_11 : f32 to vector<64x512xf32>
    %15 = arith.maximumf %13, %14 : vector<64x512xf32>
    %16 = arith.truncf %15 : vector<64x512xf32> to vector<64x512xbf16>
    %c0_12 = arith.constant 0 : index
    %c0_13 = arith.constant 0 : index
    %17 = vector.load %arg6[%c0_12, %c0_13] : memref<512x128xbf16, #tpu.memory_space<vmem>>, vector<512x128xbf16>
    %cst_14 = arith.constant dense<0.000000e+00> : vector<64x128xf32>
    %18 = tpu.matmul %16, %17, %cst_14 {dimension_numbers = #tpu.dot_dimension_numbers<[1], [0], [0], [1], [0, 0, 1, 1], [], []>} : vector<64x512xbf16>, vector<512x128xbf16>, vector<64x128xf32> -> vector<64x128xf32>
    %c0_15 = arith.constant 0 : index
    %c0_16 = arith.constant 0 : index
    %19 = vector.load %arg7[%c0_15, %c0_16] : memref<1x128xf32, #tpu.memory_space<vmem>>, vector<1x128xf32>
    %20 = vector.broadcast %19 : vector<1x128xf32> to vector<64x128xf32>
    %21 = arith.addf %18, %20 : vector<64x128xf32>
    %c0_17 = arith.constant 0 : index
    %c0_18 = arith.constant 0 : index
    %22 = vector.load %arg8[%c0_17, %c0_18] : memref<64x128xf32, #tpu.memory_space<vmem>>, vector<64x128xf32>
    tpu.vector_store %arg8[%c0_17, %c0_18], %21 {strides = array<i32>} : memref<64x128xf32, #tpu.memory_space<vmem>>, vector<64x128xf32>,
    return
  }
  func.func @transform_0(%arg0: i32) -> (i32, i32) {
    %c0_i32 = arith.constant 0 : i32
    %c0_i32_0 = arith.constant 0 : i32
    return %arg0, %c0_i32 : i32, i32
  }
  func.func @transform_1(%arg0: i32) -> (i32, i32) {
    %c0_i32 = arith.constant 0 : i32
    %c0_i32_0 = arith.constant 0 : i32
    %c0_i32_1 = arith.constant 0 : i32
    return %c0_i32, %c0_i32_0 : i32, i32
  }
  func.func @transform_2(%arg0: i32) -> (i32, i32) {
    %c0_i32 = arith.constant 0 : i32
    %c0_i32_0 = arith.constant 0 : i32
    %c0_i32_1 = arith.constant 0 : i32
    return %c0_i32, %c0_i32_0 : i32, i32
  }
  func.func @transform_3(%arg0: i32) -> (i32, i32) {
    %c0_i32 = arith.constant 0 : i32
    %c0_i32_0 = arith.constant 0 : i32
    %c0_i32_1 = arith.constant 0 : i32
    return %c0_i32, %c0_i32_0 : i32, i32
  }
  func.func @transform_4(%arg0: i32) -> (i32, i32) {
    %c0_i32 = arith.constant 0 : i32
    %c0_i32_0 = arith.constant 0 : i32
    %c0_i32_1 = arith.constant 0 : i32
    return %c0_i32, %c0_i32_0 : i32, i32
  }
  func.func @transform_5(%arg0: i32) -> (i32, i32) {
    %c0_i32 = arith.constant 0 : i32
    %c0_i32_0 = arith.constant 0 : i32
    %c0_i32_1 = arith.constant 0 : i32
    return %c0_i32, %c0_i32_0 : i32, i32
  }
  func.func @transform_6(%arg0: i32) -> (i32, i32) {
    %c0_i32 = arith.constant 0 : i32
    %c0_i32_0 = arith.constant 0 : i32
    %c0_i32_1 = arith.constant 0 : i32
    return %c0_i32, %c0_i32_0 : i32, i32
  }
  func.func @transform_7(%arg0: i32) -> (i32, i32) {
    %c0_i32 = arith.constant 0 : i32
    %c0_i32_0 = arith.constant 0 : i32
    return %arg0, %c0_i32 : i32, i32
  }
}

</mosaic_0001>

<bundles_post_ra>
// kernel: critic_forward.1
= control target key start
LH: loop header
LB: loop body
LE: loop exit
PB: predicated region body
PF: predicated region fallthrough
CT: control target
= control target key end

     0   :  { %12 = vsyncpa [#allocation3], 0  ;;  %s3068_s0 = inlined_call_operand.vmem [shape: bf16[64,128], index: 0, kind: input, shape index: {}]   ;;  %s3069_s1 = inlined_call_operand.vmem [shape: bf16[128,512], index: 1, kind: input, shape index: {}]   ;;  %s3070_s2 = inlined_call_operand.vmem [shape: f32[1,512], index: 2, kind: input, shape index: {}]   ;;  %s3071_s3 = inlined_call_operand.hbm [shape: bf16[512,512], index: 3, kind: input, shape index: {}]   ;;  %s3072_s4 = inlined_call_operand.vmem [shape: f32[1,512], index: 4, kind: input, shape index: {}]   ;;  %s3073_s5 = inlined_call_operand.hbm [shape: bf16[512,128], index: 5, kind: input, shape index: {}]   ;;  %s3074_s6 = inlined_call_operand.vmem [shape: f32[1,128], index: 6, kind: input, shape index: {}]   ;;  %s3075_s7 = inlined_call_operand.vmem [shape: f32[64,128], index: 7, kind: output, shape index: {}]  }
   0x1   :  { %13 = vsyncpa [#allocation5], 0  ;;  %s2704_s24 = smov [#allocation2]   ;;  %s2656_s28 = scalar_lea.hbm %s3071_s3, 16384 }
   0x2   :  { %s25_s25 = sshll.u32 %s2704_s24, 4  ;;  %p2657_p0 = scmp.ne.s32.totalorder %s3071_s3, %s2656_s28  ;;  %s26_s25 = int_to_ptr.vmem [resolvable:$true] %s25_s25 }
   0x3   :  { %p2660_p1 = scmp.lt.u32.totalorder %s2656_s28, %s3071_s3 }
   0x5   :  { %p2662_p2 = pnand %p2660_p1, %p2657_p0 }
   0x7   :  { %2665 = shalt.err (!%p2662_p2)
}
   0x8   :  { %s2666_s10 = scalar_lea.vmem %s26_s25, 16384  ;;  %p2671_p4 = scmp.lt.s32.totalorder %s26_s25, %s26_s25 }
   0x9   :  { %p2667_p3 = scmp.ne.s32.totalorder %s26_s25, %s2666_s10  ;;  %p2672_p5 = scmp.lt.s32.totalorder %s2666_s10, %s2666_s10 }
   0xb   :  { %p2673_p6 = por %p2672_p5, %p2671_p4 }
   0xd   :  { %p2674_p7 = pnand %p2673_p6, %p2667_p3 }
   0xf   :  { %2677 = shalt.err (!%p2674_p7)
}
  0x10   :  { %s2705_s11 = smov 256   ;;  %s2706_s12 = smov 16  }
  0x11   :  { %31 = dma.hbm_to_vmem [thread:$0]  %s3071_s3, 16384, %s26_s25, [#allocation3], %s2705_s11, %s2705_s11, %s2706_s12  }
  0x12   :  { %s2707_s15 = smov [#allocation4]   ;;  %s2678_s19 = scalar_lea.hbm %s3073_s5, 4096 }
  0x13   :  { %s39_s16 = sshll.u32 %s2707_s15, 4  ;;  %p2679_p8 = scmp.ne.s32.totalorder %s3073_s5, %s2678_s19  ;;  %s40_s16 = int_to_ptr.vmem [resolvable:$true] %s39_s16 }
  0x14   :  { %p2682_p9 = scmp.lt.u32.totalorder %s2678_s19, %s3073_s5 }
  0x16   :  { %p2684_p10 = pnand %p2682_p9, %p2679_p8 }
  0x18   :  { %2687 = shalt.err (!%p2684_p10)
}
  0x19   :  { %s2688_s24 = scalar_lea.vmem %s40_s16, 4096  ;;  %p2693_p12 = scmp.lt.s32.totalorder %s40_s16, %s40_s16 }
  0x1a   :  { %p2689_p11 = scmp.ne.s32.totalorder %s40_s16, %s2688_s24  ;;  %p2694_p13 = scmp.lt.s32.totalorder %s2688_s24, %s2688_s24 }
  0x1c   :  { %p2695_p0 = por %p2694_p13, %p2693_p12 }
  0x1e   :  { %p2696_p1 = pnand %p2695_p0, %p2689_p11 }
  0x20   :  { %2699 = shalt.err (!%p2696_p1)
}
  0x21   :  { %s2708_s3 = smov 64   ;;  %s2709_s25 = smov 4  }
  0x22   :  { %45 = dma.hbm_to_vmem [thread:$0]  %s3073_s5, 4096, %s40_s16, [#allocation5], %s2708_s3, %s2708_s3, %s2709_s25  }
  0x23   :  { %2700 = dma.done.wait [#allocation3], 16384  }
  0x24   :  { %2701 = vsyncadd [#allocation3], 4294950912 }
  0x25   :  { %2702 = dma.done.wait [#allocation5], 4096  }
  0x26   :  { %2703 = vsyncadd [#allocation5], 4294963200  ;;  %v2710_v0 = vmov 0   ;;  %v2380_v1 = vld [vmem:[%s3069_s1 + $0x4] ss:$16 sps:$4 sm:$0xff]   ;;  %v2411_v38 = vld [vmem:[%s3068_s0 + $0x8] sm:$0xff]  }
  0x27   :  { %333 = vmatprep.mubr.bf16.mxu0 %v2710_v0  ;;  %406 = vmatprep.mubr.bf16.mxu1 %v2710_v0  ;;  %v2382_v2 = vld [vmem:[%s3069_s1] ss:$16 sps:$4 sm:$0xff]   ;;  %v2383_v3 = vld [vmem:[%s3069_s1 + $0x24] ss:$16 sps:$4 sm:$0xff]   ;;  %v2405_v10 = vld [vmem:[%s3069_s1 + $0xc] ss:$16 sps:$4 sm:$0xff]  }
  0x28   :  { %301 = vmatprep.subr.bf16.mxu0 %v2380_v1  ;;  %v2385_v4 = vld [vmem:[%s3069_s1 + $0x20] ss:$16 sps:$4 sm:$0xff]   ;;  %v2386_v5 = vld [vmem:[%s3069_s1 + $0x44] ss:$16 sps:$4 sm:$0xff]   ;;  %v2407_v11 = vld [vmem:[%s3069_s1 + $0x8] ss:$16 sps:$4 sm:$0xff]   ;;  %374 = vmatprep.subr.bf16.mxu1 %v2405_v10 }
  0x29   :  { %302 = vmatpush1.bf16.msra.mxu0 %v2382_v2  ;;  %v2388_v6 = vld [vmem:[%s3069_s1 + $0x40] ss:$16 sps:$4 sm:$0xff]   ;;  %v2389_v7 = vld [vmem:[%s3069_s1 + $0x64] ss:$16 sps:$4 sm:$0xff]   ;;  %v2408_v12 = vld [vmem:[%s3069_s1 + $0x2c] ss:$16 sps:$4 sm:$0xff]   ;;  %375 = vmatpush1.bf16.msra.mxu1 %v2407_v11 }
  0x2a   :  { %303 = vmatprep.subr.bf16.mxu0 %v2383_v3  ;;  %v2391_v8 = vld [vmem:[%s3069_s1 + $0x60] ss:$16 sps:$4 sm:$0xff]   ;;  %v2392_v9 = vld [vmem:[%s3069_s1 + $0x84] ss:$16 sps:$4 sm:$0xff]   ;;  %v2410_v14 = vld [vmem:[%s3069_s1 + $0x28] ss:$16 sps:$4 sm:$0xff]   ;;  %376 = vmatprep.subr.bf16.mxu1 %v2408_v12 }
  0x2b   :  { %v2394_v13 = vld [vmem:[%s3069_s1 + $0x80] ss:$16 sps:$4 sm:$0xff]   ;;  %v2395_v15 = vld [vmem:[%s3069_s1 + $0xa4] ss:$16 sps:$4 sm:$0xff]   ;;  %v2412_v16 = vld [vmem:[%s3069_s1 + $0x4c] ss:$16 sps:$4 sm:$0xff]  }
  0x2c   :  { %v2397_v17 = vld [vmem:[%s3069_s1 + $0xa0] ss:$16 sps:$4 sm:$0xff]   ;;  %v2398_v18 = vld [vmem:[%s3069_s1 + $0xc4] ss:$16 sps:$4 sm:$0xff]   ;;  %v2414_v19 = vld [vmem:[%s3069_s1 + $0x48] ss:$16 sps:$4 sm:$0xff]  }
  0x2d   :  { %304 = vmatpush1.bf16.msra.mxu0 %v2385_v4  ;;  %377 = vmatpush1.bf16.msra.mxu1 %v2410_v14  ;;  %v2415_v20 = vld [vmem:[%s3069_s1 + $0x6c] ss:$16 sps:$4 sm:$0xff]   ;;  %v2400_v21 = vld [vmem:[%s3069_s1 + $0xc0] ss:$16 sps:$4 sm:$0xff]   ;;  %v2401_v22 = vld [vmem:[%s3069_s1 + $0xe4] ss:$16 sps:$4 sm:$0xff]  }
  0x2e   :  { %305 = vmatprep.subr.bf16.mxu0 %v2386_v5  ;;  %378 = vmatprep.subr.bf16.mxu1 %v2412_v16  ;;  %v2417_v23 = vld [vmem:[%s3069_s1 + $0x68] ss:$16 sps:$4 sm:$0xff]   ;;  %v2419_v24 = vld [vmem:[%s3069_s1 + $0x8c] ss:$16 sps:$4 sm:$0xff]   ;;  %v2403_v25 = vld [vmem:[%s3069_s1 + $0xe0] ss:$16 sps:$4 sm:$0xff]  }
  0x2f   :  { %v2421_v26 = vld [vmem:[%s3069_s1 + $0x88] ss:$16 sps:$4 sm:$0xff]   ;;  %v2422_v27 = vld [vmem:[%s3069_s1 + $0xac] ss:$16 sps:$4 sm:$0xff]   ;;  %v2434_v28 = vld [vmem:[#allocation2 + $0x4] ss:$16 sps:$4 sm:$0xff]  }
  0x30   :  { %v2404_v29 = vld [vmem:[%s3068_s0] sm:$0xff]   ;;  %v2424_v30 = vld [vmem:[%s3069_s1 + $0xa8] ss:$16 sps:$4 sm:$0xff]   ;;  %v2426_v31 = vld [vmem:[%s3069_s1 + $0xcc] ss:$16 sps:$4 sm:$0xff]  }
  0x31   :  { %306 = vmatpush1.bf16.msra.mxu0 %v2388_v6  ;;  %379 = vmatpush1.bf16.msra.mxu1 %v2414_v19  ;;  %v2432_v32 = vld [vmem:[#allocation2] ss:$16 sps:$4 sm:$0xff]   ;;  %v2440_v33 = vld [vmem:[#allocation2 + $0x24] ss:$16 sps:$4 sm:$0xff]   ;;  %v2428_v34 = vld [vmem:[%s3069_s1 + $0xc8] ss:$16 sps:$4 sm:$0xff]  }
  0x32   :  { %307 = vmatprep.subr.bf16.mxu0 %v2389_v7  ;;  %380 = vmatprep.subr.bf16.mxu1 %v2415_v20  ;;  %v2429_v35 = vld [vmem:[%s3069_s1 + $0xec] ss:$16 sps:$4 sm:$0xff]   ;;  %v2438_v36 = vld [vmem:[#allocation2 + $0x20] ss:$16 sps:$4 sm:$0xff]   ;;  %v2446_v37 = vld [vmem:[#allocation2 + $0x44] ss:$16 sps:$4 sm:$0xff]  }
  0x33   :  { %v2431_v39 = vld [vmem:[%s3069_s1 + $0xe8] ss:$16 sps:$4 sm:$0xff]   ;;  %v2437_v40 = vld [vmem:[#allocation2 + $0xc] ss:$16 sps:$4 sm:$0xff]   ;;  %v2444_v41 = vld [vmem:[#allocation2 + $0x40] ss:$16 sps:$4 sm:$0xff]  }
  0x34   :  { %v2452_v42 = vld [vmem:[#allocation2 + $0x64] ss:$16 sps:$4 sm:$0xff]   ;;  %v2435_v43 = vld [vmem:[#allocation2 + $0x8] ss:$16 sps:$4 sm:$0xff]   ;;  %v2443_v44 = vld [vmem:[#allocation2 + $0x2c] ss:$16 sps:$4 sm:$0xff]  }
  0x35   :  { %308 = vmatpush1.bf16.msra.mxu0 %v2391_v8  ;;  %381 = vmatpush1.bf16.msra.mxu1 %v2417_v23  ;;  %v2450_v45 = vld [vmem:[#allocation2 + $0x60] ss:$16 sps:$4 sm:$0xff]   ;;  %v2458_v46 = vld [vmem:[#allocation2 + $0x84] ss:$16 sps:$4 sm:$0xff]   ;;  %v2441_v48 = vld [vmem:[#allocation2 + $0x28] ss:$16 sps:$4 sm:$0xff]  }
  0x36   :  { %309 = vmatprep.subr.bf16.mxu0 %v2392_v9  ;;  %382 = vmatprep.subr.bf16.mxu1 %v2419_v24  ;;  %v2418_v47 = vld [vmem:[%s3068_s0 + $0x10] sm:$0xff]   ;;  %v2449_v49 = vld [vmem:[#allocation2 + $0x4c] ss:$16 sps:$4 sm:$0xff]   ;;  %v2447_v52 = vld [vmem:[#allocation2 + $0x48] ss:$16 sps:$4 sm:$0xff]  }
  0x37   :  { %v2456_v50 = vld [vmem:[#allocation2 + $0x80] ss:$16 sps:$4 sm:$0xff]   ;;  %v2464_v51 = vld [vmem:[#allocation2 + $0xa4] ss:$16 sps:$4 sm:$0xff]   ;;  %v2455_v53 = vld [vmem:[#allocation2 + $0x6c] ss:$16 sps:$4 sm:$0xff]  }
  0x38   :  { %v2462_v54 = vld [vmem:[#allocation2 + $0xa0] ss:$16 sps:$4 sm:$0xff]   ;;  %v2470_v55 = vld [vmem:[#allocation2 + $0xc4] ss:$16 sps:$4 sm:$0xff]   ;;  %v2425_v56 = vld [vmem:[%s3068_s0 + $0x18] sm:$0xff]  }
  0x39   :  { %310 = vmatpush1.bf16.msra.mxu0 %v2394_v13  ;;  %383 = vmatpush1.bf16.msra.mxu1 %v2421_v26  ;;  %v2453_v57 = vld [vmem:[#allocation2 + $0x68] ss:$16 sps:$4 sm:$0xff]   ;;  %v2461_v58 = vld [vmem:[#allocation2 + $0x8c] ss:$16 sps:$4 sm:$0xff]   ;;  %v2468_v59 = vld [vmem:[#allocation2 + $0xc0] ss:$16 sps:$4 sm:$0xff]  }
  0x3a   :  { %311 = vmatprep.subr.bf16.mxu0 %v2395_v15  ;;  %384 = vmatprep.subr.bf16.mxu1 %v2422_v27  ;;  %v2476_v60 = vld [vmem:[#allocation2 + $0xe4] ss:$16 sps:$4 sm:$0xff]   ;;  %v2459_v61 = vld [vmem:[#allocation2 + $0x88] ss:$16 sps:$4 sm:$0xff]   ;;  %v2467_v62 = vld [vmem:[#allocation2 + $0xac] ss:$16 sps:$4 sm:$0xff]  }
  0x3b   :  { %v2474_v63 = vld [vmem:[#allocation2 + $0xe0] ss:$16 sps:$4 sm:$0xff]   ;;  %v2482_v1 = vld [vmem:[#allocation2 + $0x104] ss:$16 sps:$4 sm:$0xff]   ;;  %v2465_v2 = vld [vmem:[#allocation2 + $0xa8] ss:$16 sps:$4 sm:$0xff]  }
  0x3c   :  { %v2473_v3 = vld [vmem:[#allocation2 + $0xcc] ss:$16 sps:$4 sm:$0xff]   ;;  %v2480_v4 = vld [vmem:[#allocation2 + $0x100] ss:$16 sps:$4 sm:$0xff]   ;;  %v2488_v5 = vld [vmem:[#allocation2 + $0x124] ss:$16 sps:$4 sm:$0xff]  }
  0x3d   :  { %312 = vmatpush1.bf16.msra.mxu0 %v2397_v17  ;;  %385 = vmatpush1.bf16.msra.mxu1 %v2424_v30  ;;  %v2471_v6 = vld [vmem:[#allocation2 + $0xc8] ss:$16 sps:$4 sm:$0xff]   ;;  %v2479_v7 = vld [vmem:[#allocation2 + $0xec] ss:$16 sps:$4 sm:$0xff]   ;;  %v2486_v8 = vld [vmem:[#allocation2 + $0x120] ss:$16 sps:$4 sm:$0xff]  }
  0x3e   :  { %313 = vmatprep.subr.bf16.mxu0 %v2398_v18  ;;  %386 = vmatprep.subr.bf16.mxu1 %v2426_v31  ;;  %v2494_v9 = vld [vmem:[#allocation2 + $0x144] ss:$16 sps:$4 sm:$0xff]   ;;  %v2477_v10 = vld [vmem:[#allocation2 + $0xe8] ss:$16 sps:$4 sm:$0xff]   ;;  %v2485_v11 = vld [vmem:[#allocation2 + $0x10c] ss:$16 sps:$4 sm:$0xff]  }
  0x3f   :  { %v2492_v12 = vld [vmem:[#allocation2 + $0x140] ss:$16 sps:$4 sm:$0xff]   ;;  %v2500_v13 = vld [vmem:[#allocation2 + $0x164] ss:$16 sps:$4 sm:$0xff]   ;;  %v2491_v14 = vld [vmem:[#allocation2 + $0x12c] ss:$16 sps:$4 sm:$0xff]  }
  0x40   :  { %v2498_v15 = vld [vmem:[#allocation2 + $0x160] ss:$16 sps:$4 sm:$0xff]   ;;  %v2506_v16 = vld [vmem:[#allocation2 + $0x184] ss:$16 sps:$4 sm:$0xff]   ;;  %v2489_v17 = vld [vmem:[#allocation2 + $0x128] ss:$16 sps:$4 sm:$0xff]  }
  0x41   :  { %314 = vmatpush1.bf16.msra.mxu0 %v2400_v21  ;;  %387 = vmatpush1.bf16.msra.mxu1 %v2428_v34  ;;  %v2497_v18 = vld [vmem:[#allocation2 + $0x14c] ss:$16 sps:$4 sm:$0xff]   ;;  %v2504_v19 = vld [vmem:[#allocation2 + $0x180] ss:$16 sps:$4 sm:$0xff]   ;;  %v2512_v20 = vld [vmem:[#allocation2 + $0x1a4] ss:$16 sps:$4 sm:$0xff]  }
  0x42   :  { %315 = vmatprep.subr.bf16.mxu0 %v2401_v22  ;;  %388 = vmatprep.subr.bf16.mxu1 %v2429_v35  ;;  %v2495_v21 = vld [vmem:[#allocation2 + $0x148] ss:$16 sps:$4 sm:$0xff]   ;;  %v2503_v22 = vld [vmem:[#allocation2 + $0x16c] ss:$16 sps:$4 sm:$0xff]   ;;  %v2510_v23 = vld [vmem:[#allocation2 + $0x1a0] ss:$16 sps:$4 sm:$0xff]  }
  0x43   :  { %v2501_v24 = vld [vmem:[#allocation2 + $0x168] ss:$16 sps:$4 sm:$0xff]   ;;  %v2515_v27 = vld [vmem:[#allocation2 + $0x1ac] ss:$16 sps:$4 sm:$0xff]   ;;  %v2516_v31 = vld [vmem:[#allocation2 + $0x1c0] ss:$16 sps:$4 sm:$0xff]  }
  0x44   :  { %v2507_v26 = vld [vmem:[#allocation2 + $0x188] ss:$16 sps:$4 sm:$0xff]   ;;  %v2521_v30 = vld [vmem:[#allocation2 + $0x1cc] ss:$16 sps:$4 sm:$0xff]   ;;  %v2522_v35 = vld [vmem:[#allocation2 + $0x1e0] ss:$16 sps:$4 sm:$0xff]  }
  0x45   :  { %316 = vmatpush1.bf16.msra.mxu0 %v2403_v25  ;;  %389 = vmatpush1.bf16.msra.mxu1 %v2431_v39  ;;  %v2509_v25 = vld [vmem:[#allocation2 + $0x18c] ss:$16 sps:$4 sm:$0xff]   ;;  %v97_v39 = vlaneseq }
  0x46   :  { %1285 = vmatprep.subr.bf16.mxu0 %v2434_v28  ;;  %1431 = vmatprep.subr.bf16.mxu1 %v2437_v40  ;;  %v2513_v28 = vld [vmem:[#allocation2 + $0x1a8] ss:$16 sps:$4 sm:$0xff]   ;;  %v2527_v34 = vld [vmem:[#allocation2 + $0x1ec] ss:$16 sps:$4 sm:$0xff]  }
  0x47   :  { %v2891_v40 = vshrl.u32 %v97_v39, 7 }
  0x48   :  { %334 = vmatmul.mubr.bf16.vlgmr.msra.gmra.mrb[0].mxu0 %v2404_v29  ;;  %407 = vmatmul.mubr.bf16.vlgmr.msra.gmra.mrb[0].mxu1 %v2404_v29  ;;  %v2518_v29 = vld [vmem:[#allocation2 + $0x1c4] ss:$16 sps:$4 sm:$0xff]  }
  0x49   :  { %343 = vmatprep.mubr.bf16.mxu0 %v2710_v0  ;;  %1286 = vmatpush1.bf16.msra.mxu0 %v2432_v32  ;;  %v2519_v32 = vld [vmem:[#allocation2 + $0x1c8] ss:$16 sps:$4 sm:$0xff]  }
  0x4a   :  { %1287 = vmatprep.subr.bf16.mxu0 %v2440_v33  ;;  %416 = vmatprep.mubr.bf16.mxu1 %v2710_v0  ;;  %v2524_v33 = vld [vmem:[#allocation2 + $0x1e4] ss:$16 sps:$4 sm:$0xff]  }
  0x4b   :  { %1432 = vmatpush1.bf16.msra.mxu1 %v2435_v43  ;;  %v103_v43 = vsub.s32 1, %v2891_v40 }
  0x4c   :  { %1433 = vmatprep.subr.bf16.mxu1 %v2443_v44 }
  0x4d   :  { %1288 = vmatpush1.bf16.msra.mxu0 %v2438_v36  ;;  %v2525_v36 = vld [vmem:[#allocation2 + $0x1e8] ss:$16 sps:$4 sm:$0xff]  }
  0x4e   :  { %1289 = vmatprep.subr.bf16.mxu0 %v2446_v37  ;;  %v2530_v37 = vld [vmem:[#allocation2 + $0x204] ss:$16 sps:$4 sm:$0xff]  }
  0x4f   :  { %1434 = vmatpush1.bf16.msra.mxu1 %v2441_v48 }
  0x50   :  { %344 = vmatmul.mubr.bf16.gmra.mrb[4].mxu0 %v2411_v38  ;;  %1435 = vmatprep.subr.bf16.mxu1 %v2449_v49 }
  0x51   :  { %353 = vmatprep.mubr.bf16.mxu0 %v2710_v0  ;;  %1290 = vmatpush1.bf16.msra.mxu0 %v2444_v41  ;;  %v99_v41 = vsub.s32 0, %v2891_v40 }
  0x52   :  { %1291 = vmatprep.subr.bf16.mxu0 %v2452_v42  ;;  %417 = vmatmul.mubr.bf16.gmra.mrb[4].mxu1 %v2411_v38  ;;  %v2533_v38 = vld [vmem:[#allocation2 + $0x20c] ss:$16 sps:$4 sm:$0xff]   ;;  %v95_v42 = vld [vmem:[%s3070_s2] sm:$0xf] }
  0x53   :  { %426 = vmatprep.mubr.bf16.mxu1 %v2710_v0  ;;  %1436 = vmatpush1.bf16.msra.mxu1 %v2447_v52  ;;  %v2900_v44 = vrot.slane %v95_v42, %v99_v41 }
  0x54   :  { %1437 = vmatprep.subr.bf16.mxu1 %v2455_v53 }
  0x55   :  { %1292 = vmatpush1.bf16.msra.mxu0 %v2450_v45  ;;  %v2904_v45 = vrot.slane %v95_v42, %v103_v43 }
  0x56   :  { %1293 = vmatprep.subr.bf16.mxu0 %v2458_v46 }
  0x57   :  { %1438 = vmatpush1.bf16.msra.mxu1 %v2453_v57 }
  0x58   :  { %354 = vmatmul.mubr.bf16.gmra.mrb[8].mxu0 %v2418_v47  ;;  %1439 = vmatprep.subr.bf16.mxu1 %v2461_v58 }
  0x59   :  { %363 = vmatprep.mubr.bf16.mxu0 %v2710_v0  ;;  %1294 = vmatpush1.bf16.msra.mxu0 %v2456_v50 }
  0x5a   :  { %1295 = vmatprep.subr.bf16.mxu0 %v2464_v51  ;;  %427 = vmatmul.mubr.bf16.gmra.mrb[8].mxu1 %v2418_v47 }
  0x5b   :  { %436 = vmatprep.mubr.bf16.mxu1 %v2710_v0  ;;  %1440 = vmatpush1.bf16.msra.mxu1 %v2459_v61  ;;  %v2483_v0 = vld [vmem:[#allocation2 + $0x108] ss:$16 sps:$4 sm:$0xff]  }
  0x5c   :  { %1441 = vmatprep.subr.bf16.mxu1 %v2467_v62  ;;  %v2528_v62 = vld [vmem:[#allocation2 + $0x200] ss:$16 sps:$4 sm:$0xff]  }
  0x5d   :  { %1296 = vmatpush1.bf16.msra.mxu0 %v2462_v54 }
  0x5e   :  { %1297 = vmatprep.subr.bf16.mxu0 %v2470_v55 }
  0x5f   :  { %1442 = vmatpush1.bf16.msra.mxu1 %v2465_v2  ;;  %v2536_v2 = vld [vmem:[#allocation2 + $0x224] ss:$16 sps:$4 sm:$0xff]  }
  0x60   :  { %364 = vmatmul.mubr.bf16.gmra.mrb[12].mxu0 %v2425_v56  ;;  %1443 = vmatprep.subr.bf16.mxu1 %v2473_v3  ;;  %v2539_v3 = vld [vmem:[#allocation2 + $0x22c] ss:$16 sps:$4 sm:$0xff]  }
  0x61   :  { %1298 = vmatpush1.bf16.msra.mxu0 %v2468_v59  ;;  %v111_v59 = vsub.s32 3, %v2891_v40 }
  0x62   :  { %1299 = vmatprep.subr.bf16.mxu0 %v2476_v60  ;;  %437 = vmatmul.mubr.bf16.gmra.mrb[12].mxu1 %v2425_v56  ;;  %v107_v56 = vsub.s32 2, %v2891_v40 }
  0x63   :  { %1444 = vmatpush1.bf16.msra.mxu1 %v2471_v6 }
  0x64   :  { %1445 = vmatprep.subr.bf16.mxu1 %v2479_v7  ;;  %v2915_v6 = vrot.slane %v95_v42, %v107_v56 }
  0x65   :  { %1300 = vmatpush1.bf16.msra.mxu0 %v2474_v63  ;;  %v2531_v63 = vld [vmem:[#allocation2 + $0x208] ss:$16 sps:$4 sm:$0xff]  }
  0x66   :  { %1301 = vmatprep.subr.bf16.mxu0 %v2482_v1 }
  0x67   :  { %1446 = vmatpush1.bf16.msra.mxu1 %v2477_v10 }
  0x68   :  { %1447 = vmatprep.subr.bf16.mxu1 %v2485_v11 }
  0x69   :  { %1302 = vmatpush1.bf16.msra.mxu0 %v2480_v4 }
  0x6a   :  { %1303 = vmatprep.subr.bf16.mxu0 %v2488_v5 }
  0x6b   :  { %1448 = vmatpush1.bf16.msra.mxu1 %v2483_v0  ;;  %v2537_v0 = vld [vmem:[#allocation2 + $0x228] ss:$16 sps:$4 sm:$0xff]  }
  0x6c   :  { %1449 = vmatprep.subr.bf16.mxu1 %v2491_v14 }
  0x6d   :  { %1304 = vmatpush1.bf16.msra.mxu0 %v2486_v8 }
  0x6e   :  { %1305 = vmatprep.subr.bf16.mxu0 %v2494_v9  ;;  %v2920_v9 = vrot.slane %v95_v42, %v111_v59 }
  0x6f   :  { %1450 = vmatpush1.bf16.msra.mxu1 %v2489_v17  ;;  %v2542_v17 = vld [vmem:[#allocation2 + $0x244] ss:$16 sps:$4 sm:$0xff]  }
  0x70   :  { %1451 = vmatprep.subr.bf16.mxu1 %v2497_v18  ;;  %v2545_v18 = vld [vmem:[#allocation2 + $0x24c] ss:$16 sps:$4 sm:$0xff]  }
  0x71   :  { %1306 = vmatpush1.bf16.msra.mxu0 %v2492_v12 }
  0x72   :  { %1307 = vmatprep.subr.bf16.mxu0 %v2500_v13  ;;  %v2534_v13 = vld [vmem:[#allocation2 + $0x220] ss:$16 sps:$4 sm:$0xff]  }
  0x73   :  { %1452 = vmatpush1.bf16.msra.mxu1 %v2495_v21 }
  0x74   :  { %1453 = vmatprep.subr.bf16.mxu1 %v2503_v22 }
  0x75   :  { %1308 = vmatpush1.bf16.msra.mxu0 %v2498_v15 }
  0x76   :  { %1309 = vmatprep.subr.bf16.mxu0 %v2506_v16 }
  0x77   :  { %1454 = vmatpush1.bf16.msra.mxu1 %v2501_v24 }
  0x78   :  { %1455 = vmatprep.subr.bf16.mxu1 %v2509_v25 }
  0x79   :  { %1310 = vmatpush1.bf16.msra.mxu0 %v2504_v19 }
  0x7a   :  { %1311 = vmatprep.subr.bf16.mxu0 %v2512_v20 }
  0x7b   :  { %1456 = vmatpush1.bf16.msra.mxu1 %v2507_v26 }
  0x7c   :  { %1457 = vmatprep.subr.bf16.mxu1 %v2515_v27 }
  0x7d   :  { %1312 = vmatpush1.bf16.msra.mxu0 %v2510_v23 }
  0x7e   :  { %1313 = vmatprep.subr.bf16.mxu0 %v2518_v29  ;;  %v2540_v29 = vld [vmem:[#allocation2 + $0x240] ss:$16 sps:$4 sm:$0xff]  }
  0x7f   :  { %1458 = vmatpush1.bf16.msra.mxu1 %v2513_v28 }
  0x80   :  { %1459 = vmatprep.subr.bf16.mxu1 %v2521_v30  ;;  %v2543_v30 = vld [vmem:[#allocation2 + $0x248] ss:$16 sps:$4 sm:$0xff]  }
  0x81   :  { %1314 = vmatpush1.bf16.msra.mxu0 %v2516_v31 }
  0x82   :  { %1315 = vmatprep.subr.bf16.mxu0 %v2524_v33 }
  0x83   :  { %1460 = vmatpush1.bf16.msra.mxu1 %v2519_v32 }
  0x84   :  { %1461 = vmatprep.subr.bf16.mxu1 %v2527_v34 }
  0x85   :  { %1316 = vmatpush1.bf16.msra.mxu0 %v2522_v35  ;;  %v2548_v35 = vld [vmem:[#allocation2 + $0x264] ss:$16 sps:$4 sm:$0xff]  }
  0x86   :  { %1358 = vmatprep.subr.bf16.mxu0 %v2530_v37 }
  0x87   :  { %1462 = vmatpush1.bf16.msra.mxu1 %v2525_v36  ;;  %v2551_v36 = vld [vmem:[#allocation2 + $0x26c] ss:$16 sps:$4 sm:$0xff]  }
  0x88   :  { %1504 = vmatprep.subr.bf16.mxu1 %v2533_v38 }
 0x11b   :  { %v335_v46 = vpop.f32.mrb[0].mxu0  ;;  %v408_v16 = vpop.f32.mrb[0].mxu1 }
 0x11c   :  { %v336_v47 = vadd.f32 %v335_v46, %v2900_v44  ;;  %v337_v48 = vpop.f32.mrb[1].mxu0  ;;  %v409_v20 = vadd.f32 %v408_v16, %v2915_v6  ;;  %v410_v21 = vpop.f32.mrb[1].mxu1  ;;  %v2560_v16 = vld [vmem:[#allocation2 + $0x2a4] ss:$16 sps:$4 sm:$0xff]  }
 0x11d   :  { %v338_v49 = vadd.f32 %v337_v48, %v2904_v45  ;;  %v339_v50 = vpop.f32.mrb[2].mxu0  ;;  %v411_v23 = vadd.f32 %v410_v21, %v2920_v9  ;;  %v412_v24 = vpop.f32.mrb[2].mxu1 }
 0x11e   :  { %v340_v51 = vadd.f32 %v339_v50, %v2900_v44  ;;  %v341_v52 = vpop.f32.mrb[3].mxu0  ;;  %v447_v54 = vmax.f32 %v336_v47, 0.0  ;;  %v449_v26 = vmax.f32 %v409_v20, 0.0  ;;  %v413_v27 = vadd.f32 %v412_v24, %v2915_v6  ;;  %v414_v28 = vpop.f32.mrb[3].mxu1 }
 0x11f   :  { %v342_v53 = vadd.f32 %v341_v52, %v2904_v45  ;;  %v448_v57 = vmax.f32 %v338_v49, 0.0  ;;  %v450_v33 = vmax.f32 %v411_v23, 0.0  ;;  %v415_v34 = vadd.f32 %v414_v28, %v2920_v9  ;;  %v2546_v52 = vld [vmem:[#allocation2 + $0x260] ss:$16 sps:$4 sm:$0xff]  }
 0x120   :  { %v451_v55 = vmax.f32 %v340_v51, 0.0  ;;  %v453_v39 = vmax.f32 %v413_v27, 0.0  ;;  %v2558_v28 = vld [vmem:[#allocation2 + $0x2a0] ss:$16 sps:$4 sm:$0xff]  }
 0x121   :  { %v452_v58 = vmax.f32 %v342_v53, 0.0  ;;  %v454_v47 = vmax.f32 %v415_v34, 0.0  ;;  %v2549_v53 = vld [vmem:[#allocation2 + $0x268] ss:$16 sps:$4 sm:$0xff]   ;;  %v2566_v34 = vld [vmem:[#allocation2 + $0x2c4] ss:$16 sps:$4 sm:$0xff]  }
 0x122   :  { %v479_v60 = vpack.c.bf16 %v451_v55, %v447_v54  ;;  %v2931_v51 = vpack.c.bf16 %v453_v39, %v449_v26 }
 0x123   :  { %v480_v61 = vpack.c.bf16 %v452_v58, %v448_v57  ;;  %v345_v1 = vpop.f32.mrb[4].mxu0  ;;  %v2934_v57 = vpack.c.bf16 %v454_v47, %v450_v33 }
 0x124   :  { %v346_v4 = vadd.f32 %v345_v1, %v2900_v44  ;;  %v347_v5 = vpop.f32.mrb[5].mxu0 }
 0x125   :  { %1317 = vmatprep.mubr.bf16.mxu0 %v480_v61  ;;  %1463 = vmatprep.mubr.bf16.mxu1 %v480_v61  ;;  %v348_v7 = vadd.f32 %v347_v5, %v2904_v45  ;;  %v349_v8 = vpop.f32.mrb[6].mxu0  ;;  %v418_v58 = vpop.f32.mrb[4].mxu1  ;;  %v2557_v61 = vld [vmem:[#allocation2 + $0x28c] ss:$16 sps:$4 sm:$0xff]  }
 0x126   :  { %1318 = vmatmul.mubr.bf16.vlgmr.msra.gmra.mrb[16].mxu0 %v479_v60  ;;  %1464 = vmatmul.mubr.bf16.vlgmr.msra.gmra.mrb[16].mxu1 %v479_v60  ;;  %v455_v10 = vmax.f32 %v346_v4, 0.0  ;;  %v350_v11 = vadd.f32 %v349_v8, %v2900_v44  ;;  %v351_v12 = vpop.f32.mrb[7].mxu0  ;;  %v2554_v60 = vld [vmem:[#allocation2 + $0x284] ss:$16 sps:$4 sm:$0xff]   ;;  %v420_v1 = vpop.f32.mrb[5].mxu1 }
 0x127   :  { %1359 = vmatpush1.bf16.msra.mxu0 %v2528_v62  ;;  %1505 = vmatpush1.bf16.msra.mxu1 %v2531_v63  ;;  %v456_v14 = vmax.f32 %v348_v7, 0.0  ;;  %v352_v15 = vadd.f32 %v351_v12, %v2904_v45  ;;  %v419_v63 = vadd.f32 %v418_v58, %v2915_v6  ;;  %v422_v4 = vpop.f32.mrb[6].mxu1  ;;  %v2555_v12 = vld [vmem:[#allocation2 + $0x288] ss:$16 sps:$4 sm:$0xff]   ;;  %v2575_v58 = vld [vmem:[#allocation2 + $0x2ec] ss:$16 sps:$4 sm:$0xff]  }
 0x128   :  { %1360 = vmatprep.subr.bf16.mxu0 %v2536_v2  ;;  %1506 = vmatprep.subr.bf16.mxu1 %v2539_v3  ;;  %v459_v19 = vmax.f32 %v350_v11, 0.0  ;;  %v421_v3 = vadd.f32 %v420_v1, %v2920_v9  ;;  %v423_v8 = vadd.f32 %v422_v4, %v2915_v6  ;;  %v2552_v11 = vld [vmem:[#allocation2 + $0x280] ss:$16 sps:$4 sm:$0xff]   ;;  %v2573_v1 = vld [vmem:[#allocation2 + $0x2e8] ss:$16 sps:$4 sm:$0xff]  }
 0x129   :  { %v460_v22 = vmax.f32 %v352_v15, 0.0  ;;  %v457_v7 = vmax.f32 %v419_v63, 0.0  ;;  %v2570_v63 = vld [vmem:[#allocation2 + $0x2e0] ss:$16 sps:$4 sm:$0xff]   ;;  %v2578_v4 = vld [vmem:[#allocation2 + $0x304] ss:$16 sps:$4 sm:$0xff]  }
 0x12a   :  { %v483_v25 = vpack.c.bf16 %v459_v19, %v455_v10  ;;  %v424_v10 = vpop.f32.mrb[7].mxu1  ;;  %v461_v20 = vmax.f32 %v423_v8, 0.0 }
 0x12b   :  { %1361 = vmatpush1.bf16.msra.mxu0 %v2534_v13  ;;  %1507 = vmatpush1.bf16.msra.mxu1 %v2537_v0  ;;  %v484_v31 = vpack.c.bf16 %v460_v22, %v456_v14  ;;  %v355_v32 = vpop.f32.mrb[8].mxu0  ;;  %v458_v14 = vmax.f32 %v421_v3, 0.0  ;;  %v425_v15 = vadd.f32 %v424_v10, %v2920_v9 }
 0x12c   :  { %1362 = vmatprep.subr.bf16.mxu0 %v2542_v17  ;;  %1508 = vmatprep.subr.bf16.mxu1 %v2545_v18  ;;  %v356_v37 = vadd.f32 %v355_v32, %v2900_v44  ;;  %v357_v38 = vpop.f32.mrb[9].mxu0  ;;  %v2563_v17 = vld [vmem:[#allocation2 + $0x2ac] ss:$16 sps:$4 sm:$0xff]   ;;  %v2943_v27 = vpack.c.bf16 %v461_v20, %v457_v7 }
 0x12d   :  { %v358_v42 = vadd.f32 %v357_v38, %v2904_v45  ;;  %v359_v46 = vpop.f32.mrb[10].mxu0  ;;  %1327 = vmatprep.mubr.bf16.mxu0 %v484_v31  ;;  %1473 = vmatprep.mubr.bf16.mxu1 %v484_v31  ;;  %v462_v23 = vmax.f32 %v425_v15, 0.0  ;;  %v428_v33 = vpop.f32.mrb[8].mxu1  ;;  %v2579_v15 = vld [vmem:[#allocation2 + $0x308] ss:$16 sps:$4 sm:$0xff]  }
 0x12e   :  { %v463_v48 = vmax.f32 %v356_v37, 0.0  ;;  %v360_v49 = vadd.f32 %v359_v46, %v2900_v44  ;;  %v361_v50 = vpop.f32.mrb[11].mxu0  ;;  %1328 = vmatmul.mubr.bf16.gmra.mrb[20].mxu0 %v483_v25  ;;  %1474 = vmatmul.mubr.bf16.gmra.mrb[20].mxu1 %v483_v25  ;;  %v430_v37 = vpop.f32.mrb[9].mxu1 }
 0x12f   :  { %1363 = vmatpush1.bf16.msra.mxu0 %v2540_v29  ;;  %1509 = vmatpush1.bf16.msra.mxu1 %v2543_v30  ;;  %v464_v54 = vmax.f32 %v358_v42, 0.0  ;;  %v362_v55 = vadd.f32 %v361_v50, %v2904_v45  ;;  %v2561_v29 = vld [vmem:[#allocation2 + $0x2a8] ss:$16 sps:$4 sm:$0xff]   ;;  %v2946_v32 = vpack.c.bf16 %v462_v23, %v458_v14  ;;  %v431_v39 = vadd.f32 %v430_v37, %v2920_v9  ;;  %v432_v42 = vpop.f32.mrb[10].mxu1  ;;  %v2576_v14 = vld [vmem:[#allocation2 + $0x300] ss:$16 sps:$4 sm:$0xff]  }
 0x130   :  { %1364 = vmatprep.subr.bf16.mxu0 %v2548_v35  ;;  %1510 = vmatprep.subr.bf16.mxu1 %v2551_v36  ;;  %v467_v62 = vmax.f32 %v360_v49, 0.0  ;;  %v2569_v35 = vld [vmem:[#allocation2 + $0x2cc] ss:$16 sps:$4 sm:$0xff]   ;;  %v429_v36 = vadd.f32 %v428_v33, %v2915_v6  ;;  %v2564_v49 = vld [vmem:[#allocation2 + $0x2c0] ss:$16 sps:$4 sm:$0xff]  }
 0x131   :  { %v468_v2 = vmax.f32 %v362_v55, 0.0  ;;  %v2567_v50 = vld [vmem:[#allocation2 + $0x2c8] ss:$16 sps:$4 sm:$0xff]   ;;  %v2572_v55 = vld [vmem:[#allocation2 + $0x2e4] ss:$16 sps:$4 sm:$0xff]  }
 0x132   :  { %v487_v5 = vpack.c.bf16 %v467_v62, %v463_v48  ;;  %v465_v47 = vmax.f32 %v429_v36, 0.0  ;;  %v433_v48 = vadd.f32 %v432_v42, %v2915_v6  ;;  %v2602_v33 = vld [vmem:[#allocation2 + $0x384] ss:$16 sps:$4 sm:$0xff]   ;;  %v2611_v37 = vld [vmem:[#allocation2 + $0x3ac] ss:$16 sps:$4 sm:$0xff]  }
 0x133   :  { %1365 = vmatpush1.bf16.msra.mxu0 %v2546_v52  ;;  %1511 = vmatpush1.bf16.msra.mxu1 %v2549_v53  ;;  %v488_v13 = vpack.c.bf16 %v468_v2, %v464_v54  ;;  %v365_v0 = vpop.f32.mrb[12].mxu0  ;;  %v466_v53 = vmax.f32 %v431_v39, 0.0  ;;  %v2608_v36 = vld [vmem:[#allocation2 + $0x3a4] ss:$16 sps:$4 sm:$0xff]   ;;  %v2609_v39 = vld [vmem:[#allocation2 + $0x3a8] ss:$16 sps:$4 sm:$0xff]  }
 0x134   :  { %1366 = vmatprep.subr.bf16.mxu0 %v2554_v60  ;;  %1512 = vmatprep.subr.bf16.mxu1 %v2557_v61  ;;  %v366_v18 = vadd.f32 %v365_v0, %v2900_v44  ;;  %v367_v19 = vpop.f32.mrb[13].mxu0  ;;  %v469_v60 = vmax.f32 %v433_v48, 0.0  ;;  %v2614_v42 = vld [vmem:[#allocation2 + $0x3c4] ss:$16 sps:$4 sm:$0xff]   ;;  %v2615_v48 = vld [vmem:[#allocation2 + $0x3c8] ss:$16 sps:$4 sm:$0xff]  }
 0x135   :  { %v368_v21 = vadd.f32 %v367_v19, %v2904_v45  ;;  %v369_v22 = vpop.f32.mrb[14].mxu0  ;;  %1337 = vmatprep.mubr.bf16.mxu0 %v488_v13  ;;  %1483 = vmatprep.mubr.bf16.mxu1 %v488_v13  ;;  %v2587_v19 = vld [vmem:[#allocation2 + $0x32c] ss:$16 sps:$4 sm:$0xff]  }
 0x136   :  { %v471_v24 = vmax.f32 %v366_v18, 0.0  ;;  %v370_v25 = vadd.f32 %v369_v22, %v2900_v44  ;;  %v371_v26 = vpop.f32.mrb[15].mxu0  ;;  %1338 = vmatmul.mubr.bf16.gmra.mrb[24].mxu0 %v487_v5  ;;  %1484 = vmatmul.mubr.bf16.gmra.mrb[24].mxu1 %v487_v5  ;;  %v2952_v62 = vpack.c.bf16 %v469_v60, %v465_v47  ;;  %v2581_v5 = vld [vmem:[#allocation2 + $0x30c] ss:$16 sps:$4 sm:$0xff]   ;;  %v2584_v18 = vld [vmem:[#allocation2 + $0x324] ss:$16 sps:$4 sm:$0xff]  }
 0x137   :  { %1367 = vmatpush1.bf16.msra.mxu0 %v2552_v11  ;;  %1513 = vmatpush1.bf16.msra.mxu1 %v2555_v12  ;;  %v472_v30 = vmax.f32 %v368_v21, 0.0  ;;  %v372_v31 = vadd.f32 %v371_v26, %v2904_v45  ;;  %v434_v45 = vpop.f32.mrb[11].mxu1  ;;  %v2582_v22 = vld [vmem:[#allocation2 + $0x320] ss:$16 sps:$4 sm:$0xff]   ;;  %v2591_v26 = vld [vmem:[#allocation2 + $0x348] ss:$16 sps:$4 sm:$0xff]  }
 0x138   :  { %1368 = vmatprep.subr.bf16.mxu0 %v2560_v16  ;;  %1514 = vmatprep.subr.bf16.mxu1 %v2563_v17  ;;  %v475_v44 = vmax.f32 %v370_v25, 0.0  ;;  %v435_v54 = vadd.f32 %v434_v45, %v2920_v9  ;;  %v438_v3 = vpop.f32.mrb[12].mxu1  ;;  %v2593_v25 = vld [vmem:[#allocation2 + $0x34c] ss:$16 sps:$4 sm:$0xff]   ;;  %v2612_v47 = vld [vmem:[#allocation2 + $0x3c0] ss:$16 sps:$4 sm:$0xff]  }
 0x139   :  { %v476_v38 = vmax.f32 %v372_v31, 0.0  ;;  %v439_v7 = vadd.f32 %v438_v3, %v2915_v6  ;;  %v440_v8 = vpop.f32.mrb[13].mxu1  ;;  %v2597_v31 = vld [vmem:[#allocation2 + $0x368] ss:$16 sps:$4 sm:$0xff]   ;;  %v2620_v45 = vld [vmem:[#allocation2 + $0x3e4] ss:$16 sps:$4 sm:$0xff]  }
 0x13a   :  { %v491_v46 = vpack.c.bf16 %v475_v44, %v471_v24  ;;  %v470_v61 = vmax.f32 %v435_v54, 0.0  ;;  %v441_v10 = vadd.f32 %v440_v8, %v2920_v9  ;;  %v442_v11 = vpop.f32.mrb[14].mxu1  ;;  %v2590_v24 = vld [vmem:[#allocation2 + $0x344] ss:$16 sps:$4 sm:$0xff]   ;;  %v2603_v44 = vld [vmem:[#allocation2 + $0x388] ss:$16 sps:$4 sm:$0xff]  }
 0x13b   :  { %1369 = vmatpush1.bf16.msra.mxu0 %v2558_v28  ;;  %1515 = vmatpush1.bf16.msra.mxu1 %v2561_v29  ;;  %v492_v52 = vpack.c.bf16 %v476_v38, %v472_v30  ;;  %v473_v12 = vmax.f32 %v439_v7, 0.0  ;;  %v443_v13 = vadd.f32 %v442_v11, %v2915_v6  ;;  %v444_v0 = vpop.f32.mrb[15].mxu1  ;;  %v2585_v6 = vld [vmem:[#allocation2 + $0x328] ss:$16 sps:$4 sm:$0xff]   ;;  %v2596_v28 = vld [vmem:[#allocation2 + $0x364] ss:$16 sps:$4 sm:$0xff]  }
 0x13c   :  { %1370 = vmatprep.subr.bf16.mxu0 %v2566_v34  ;;  %1516 = vmatprep.subr.bf16.mxu1 %v2569_v35  ;;  %v2954_v2 = vpack.c.bf16 %v470_v61, %v466_v53  ;;  %v474_v16 = vmax.f32 %v441_v10, 0.0  ;;  %v445_v17 = vadd.f32 %v444_v0, %v2920_v9  ;;  %v2588_v9 = vld [vmem:[#allocation2 + $0x340] ss:$16 sps:$4 sm:$0xff]   ;;  %v2599_v29 = vld [vmem:[#allocation2 + $0x36c] ss:$16 sps:$4 sm:$0xff]  }
 0x13d   :  { %1347 = vmatprep.mubr.bf16.mxu0 %v492_v52  ;;  %1493 = vmatprep.mubr.bf16.mxu1 %v492_v52  ;;  %v477_v20 = vmax.f32 %v443_v13, 0.0  ;;  %v2594_v30 = vld [vmem:[#allocation2 + $0x360] ss:$16 sps:$4 sm:$0xff]   ;;  %v2605_v34 = vld [vmem:[#allocation2 + $0x38c] ss:$16 sps:$4 sm:$0xff]  }
 0x13e   :  { %1348 = vmatmul.mubr.bf16.gmra.mrb[28].mxu0 %v491_v46  ;;  %1494 = vmatmul.mubr.bf16.gmra.mrb[28].mxu1 %v491_v46  ;;  %v2600_v35 = vld [vmem:[#allocation2 + $0x380] ss:$16 sps:$4 sm:$0xff]   ;;  %v2617_v46 = vld [vmem:[#allocation2 + $0x3cc] ss:$16 sps:$4 sm:$0xff]   ;;  %v2621_v52 = vld [vmem:[#allocation2 + $0x3e8] ss:$16 sps:$4 sm:$0xff]  }
 0x13f   :  { %1371 = vmatpush1.bf16.msra.mxu0 %v2564_v49  ;;  %1517 = vmatpush1.bf16.msra.mxu1 %v2567_v50  ;;  %v2962_v21 = vpack.c.bf16 %v477_v20, %v473_v12  ;;  %v2606_v38 = vld [vmem:[#allocation2 + $0x3a0] ss:$16 sps:$4 sm:$0xff]   ;;  %v2623_v49 = vld [vmem:[#allocation2 + $0x3ec] ss:$16 sps:$4 sm:$0xff]  }
 0x140   :  { %1372 = vmatprep.subr.bf16.mxu0 %v2572_v55  ;;  %1518 = vmatprep.subr.bf16.mxu1 %v2575_v58  ;;  %v2618_v50 = vld [vmem:[#allocation2 + $0x3e0] ss:$16 sps:$4 sm:$0xff]   ;;  %v2628_v60 = vld [vmem:[#allocation4 + $0x48] sm:$0xff]   ;;  %v2636_v8 = vld [vmem:[#allocation4 + $0x58] sm:$0xff]  }
 0x141   :  { %1390 = vmatprep.mubr.bf16.mxu0 %v2934_v57  ;;  %1536 = vmatprep.mubr.bf16.mxu1 %v2934_v57  ;;  %v478_v57 = vmax.f32 %v445_v17, 0.0  ;;  %v2624_v53 = vld [vmem:[#allocation4 + $0x40] sm:$0xff]   ;;  %v2630_v61 = vld [vmem:[#allocation4 + $0xc8] sm:$0xff]   ;;  %v2632_v3 = vld [vmem:[#allocation4 + $0x50] sm:$0xff]  }
 0x142   :  { %v2626_v54 = vld [vmem:[#allocation4 + $0xc0] sm:$0xff]   ;;  %v2635_v7 = vld [vmem:[#allocation4 + $0x90] sm:$0xff]   ;;  %v2639_v10 = vld [vmem:[#allocation4 + $0x98] sm:$0xff]  }
 0x143   :  { %1373 = vmatpush1.bf16.msra.mxu0 %v2570_v63  ;;  %1519 = vmatpush1.bf16.msra.mxu1 %v2573_v1  ;;  %v2964_v23 = vpack.c.bf16 %v478_v57, %v474_v16  ;;  %v2625_v55 = vld [vmem:[#allocation4] sm:$0xff]   ;;  %v2629_v63 = vld [vmem:[#allocation4 + $0x8] sm:$0xff]   ;;  %v2648_v16 = vld [vmem:[#allocation4 + $0x70] sm:$0xff]  }
 0x144   :  { %1374 = vmatprep.subr.bf16.mxu0 %v2578_v4  ;;  %1520 = vmatprep.subr.bf16.mxu1 %v2581_v5  ;;  %v2627_v58 = vld [vmem:[#allocation4 + $0x80] sm:$0xff]   ;;  %v2631_v1 = vld [vmem:[#allocation4 + $0x88] sm:$0xff]   ;;  %v2634_v4 = vld [vmem:[#allocation4 + $0xd0] sm:$0xff]  }
 0x145   :  { %v2633_v5 = vld [vmem:[#allocation4 + $0x10] sm:$0xff]   ;;  %v2640_v11 = vld [vmem:[#allocation4 + $0x60] sm:$0xff]   ;;  %v2654_v20 = vld [vmem:[#allocation4 + $0xf8] sm:$0xff]  }
 0x146   :  { %v2642_v12 = vld [vmem:[#allocation4 + $0xe0] sm:$0xff]   ;;  %v2650_v17 = vld [vmem:[#allocation4 + $0xf0] sm:$0xff]   ;;  %v2653_v57 = vld [vmem:[#allocation4 + $0x38] sm:$0xff]  }
 0x147   :  { %1375 = vmatpush1.bf16.msra.mxu0 %v2576_v14  ;;  %1521 = vmatpush1.bf16.msra.mxu1 %v2579_v15  ;;  %v2641_v13 = vld [vmem:[#allocation4 + $0x20] sm:$0xff]   ;;  %v2644_v14 = vld [vmem:[#allocation4 + $0x68] sm:$0xff]  }
 0x148   :  { %1376 = vmatprep.subr.bf16.mxu0 %v2584_v18  ;;  %1522 = vmatprep.subr.bf16.mxu1 %v2587_v19  ;;  %v2643_v0 = vld [vmem:[#allocation4 + $0xa0] sm:$0xff]   ;;  %v2647_v15 = vld [vmem:[#allocation4 + $0xa8] sm:$0xff]   ;;  %v2649_v18 = vld [vmem:[#allocation4 + $0x30] sm:$0xff]  }
 0x149   :  { %v2652_v19 = vld [vmem:[#allocation4 + $0x78] sm:$0xff]  }
 0x14b   :  { %1377 = vmatpush1.bf16.msra.mxu0 %v2582_v22  ;;  %1523 = vmatpush1.bf16.msra.mxu1 %v2585_v6  ;;  %v2655_v22 = vld [vmem:[#allocation4 + $0xb8] sm:$0xff]  }
 0x14c   :  { %1378 = vmatprep.subr.bf16.mxu0 %v2590_v24  ;;  %1524 = vmatprep.subr.bf16.mxu1 %v2593_v25 }
 0x14f   :  { %1379 = vmatpush1.bf16.msra.mxu0 %v2588_v9  ;;  %1525 = vmatpush1.bf16.msra.mxu1 %v2591_v26 }
 0x150   :  { %1380 = vmatprep.subr.bf16.mxu0 %v2596_v28  ;;  %1526 = vmatprep.subr.bf16.mxu1 %v2599_v29 }
 0x153   :  { %1381 = vmatpush1.bf16.msra.mxu0 %v2594_v30  ;;  %1527 = vmatpush1.bf16.msra.mxu1 %v2597_v31 }
 0x154   :  { %1382 = vmatprep.subr.bf16.mxu0 %v2602_v33  ;;  %1528 = vmatprep.subr.bf16.mxu1 %v2605_v34 }
 0x157   :  { %1383 = vmatpush1.bf16.msra.mxu0 %v2600_v35  ;;  %1529 = vmatpush1.bf16.msra.mxu1 %v2603_v44 }
 0x158   :  { %1384 = vmatprep.subr.bf16.mxu0 %v2608_v36  ;;  %1530 = vmatprep.subr.bf16.mxu1 %v2611_v37 }
 0x15b   :  { %1385 = vmatpush1.bf16.msra.mxu0 %v2606_v38  ;;  %1531 = vmatpush1.bf16.msra.mxu1 %v2609_v39 }
 0x15c   :  { %1386 = vmatprep.subr.bf16.mxu0 %v2614_v42  ;;  %1532 = vmatprep.subr.bf16.mxu1 %v2617_v46 }
 0x15f   :  { %1387 = vmatpush1.bf16.msra.mxu0 %v2612_v47  ;;  %1533 = vmatpush1.bf16.msra.mxu1 %v2615_v48 }
 0x160   :  { %1388 = vmatprep.subr.bf16.mxu0 %v2620_v45  ;;  %1534 = vmatprep.subr.bf16.mxu1 %v2623_v49 }
 0x163   :  { %1389 = vmatpush1.bf16.msra.mxu0 %v2618_v50  ;;  %1535 = vmatpush1.bf16.msra.mxu1 %v2621_v52 }
 0x164   :  { %2229 = vmatprep.subr.bf16.mxu0 %v2624_v53  ;;  %2269 = vmatprep.subr.bf16.mxu1 %v2626_v54 }
 0x166   :  { %1391 = vmatmul.mubr.bf16.vlgmr.msra.gmra.mrb[16].mxu0 %v2931_v51  ;;  %1537 = vmatmul.mubr.bf16.vlgmr.msra.gmra.mrb[16].mxu1 %v2931_v51  ;;  %v2638_v51 = vld [vmem:[#allocation4 + $0xd8] sm:$0xff]  }
 0x167   :  { %1400 = vmatprep.mubr.bf16.mxu0 %v2946_v32  ;;  %1546 = vmatprep.mubr.bf16.mxu1 %v2946_v32  ;;  %v2637_v32 = vld [vmem:[#allocation4 + $0x18] sm:$0xff]  }
 0x168   :  { %2230 = vmatpush3.bf16.msra.mxu0 %v2625_v55  ;;  %2270 = vmatpush3.bf16.msra.mxu1 %v2627_v58 }
 0x169   :  { %2231 = vmatprep.subr.bf16.mxu0 %v2628_v60  ;;  %2271 = vmatprep.subr.bf16.mxu1 %v2630_v61 }
 0x16c   :  { %2232 = vmatpush3.bf16.msra.mxu0 %v2629_v63  ;;  %2272 = vmatpush3.bf16.msra.mxu1 %v2631_v1 }
 0x16d   :  { %2233 = vmatprep.subr.bf16.mxu0 %v2632_v3  ;;  %2273 = vmatprep.subr.bf16.mxu1 %v2634_v4 }
 0x16e   :  { %1401 = vmatmul.mubr.bf16.gmra.mrb[20].mxu0 %v2943_v27  ;;  %1547 = vmatmul.mubr.bf16.gmra.mrb[20].mxu1 %v2943_v27  ;;  %v2646_v27 = vld [vmem:[#allocation4 + $0xe8] sm:$0xff]  }
 0x16f   :  { %1410 = vmatprep.mubr.bf16.mxu0 %v2954_v2  ;;  %1556 = vmatprep.mubr.bf16.mxu1 %v2954_v2  ;;  %v2645_v2 = vld [vmem:[#allocation4 + $0x28] sm:$0xff]  }
 0x170   :  { %2234 = vmatpush3.bf16.msra.mxu0 %v2633_v5  ;;  %2274 = vmatpush3.bf16.msra.mxu1 %v2635_v7 }
 0x171   :  { %2235 = vmatprep.subr.bf16.mxu0 %v2636_v8  ;;  %2275 = vmatprep.subr.bf16.mxu1 %v2638_v51 }
 0x174   :  { %2236 = vmatpush3.bf16.msra.mxu0 %v2637_v32  ;;  %2276 = vmatpush3.bf16.msra.mxu1 %v2639_v10 }
 0x175   :  { %2237 = vmatprep.subr.bf16.mxu0 %v2640_v11  ;;  %2277 = vmatprep.subr.bf16.mxu1 %v2642_v12 }
 0x176   :  { %1411 = vmatmul.mubr.bf16.gmra.mrb[24].mxu0 %v2952_v62  ;;  %1557 = vmatmul.mubr.bf16.gmra.mrb[24].mxu1 %v2952_v62  ;;  %v2651_v62 = vld [vmem:[#allocation4 + $0xb0] sm:$0xff]  }
 0x177   :  { %1420 = vmatprep.mubr.bf16.mxu0 %v2964_v23  ;;  %1566 = vmatprep.mubr.bf16.mxu1 %v2964_v23 }
 0x178   :  { %2238 = vmatpush3.bf16.msra.mxu0 %v2641_v13  ;;  %2278 = vmatpush3.bf16.msra.mxu1 %v2643_v0 }
 0x179   :  { %2239 = vmatprep.subr.bf16.mxu0 %v2644_v14  ;;  %2279 = vmatprep.subr.bf16.mxu1 %v2646_v27 }
 0x17c   :  { %2240 = vmatpush3.bf16.msra.mxu0 %v2645_v2  ;;  %2280 = vmatpush3.bf16.msra.mxu1 %v2647_v15 }
 0x17d   :  { %2241 = vmatprep.subr.bf16.mxu0 %v2648_v16  ;;  %2281 = vmatprep.subr.bf16.mxu1 %v2650_v17 }
 0x17e   :  { %1421 = vmatmul.mubr.bf16.gmra.mrb[28].mxu0 %v2962_v21  ;;  %1567 = vmatmul.mubr.bf16.gmra.mrb[28].mxu1 %v2962_v21  ;;  %v623_v21 = vld [vmem:[%s3072_s4] sm:$0xf] }
 0x17f   :  { %v2985_v6 = vrot.slane %v623_v21, %v99_v41  ;;  %v2989_v23 = vrot.slane %v623_v21, %v107_v56  ;;  %v2993_v24 = vrot.slane %v623_v21, %v103_v43  ;;  %v2997_v25 = vrot.slane %v623_v21, %v111_v59 }
 0x180   :  { %2242 = vmatpush3.bf16.msra.mxu0 %v2649_v18  ;;  %2282 = vmatpush3.bf16.msra.mxu1 %v2651_v62 }
 0x181   :  { %2243 = vmatprep.subr.bf16.mxu0 %v2652_v19  ;;  %2283 = vmatprep.subr.bf16.mxu1 %v2654_v20 }
 0x184   :  { %2244 = vmatpush3.bf16.msra.mxu0 %v2653_v57  ;;  %2284 = vmatpush3.bf16.msra.mxu1 %v2655_v22 }
 0x239   :  { %v1392_v9 = vpop.f32.mrb[16].mxu0  ;;  %v1538_v26 = vpop.f32.mrb[16].mxu1 }
 0x23a   :  { %v2309_v28 = vadd.f32 %v1392_v9, %v2985_v6  ;;  %v2325_v29 = vadd.f32 %v1538_v26, %v2989_v23  ;;  %v1394_v41 = vpop.f32.mrb[17].mxu0  ;;  %v1540_v30 = vpop.f32.mrb[17].mxu1 }
 0x23b   :  { %v2310_v31 = vadd.f32 %v1394_v41, %v2993_v24  ;;  %v2326_v56 = vadd.f32 %v1540_v30, %v2997_v25  ;;  %v1396_v33 = vpop.f32.mrb[18].mxu0  ;;  %v1542_v34 = vpop.f32.mrb[18].mxu1 }
 0x23c   :  { %v2311_v43 = vadd.f32 %v1396_v33, %v2985_v6  ;;  %v2327_v40 = vadd.f32 %v1542_v34, %v2989_v23  ;;  %v1398_v59 = vpop.f32.mrb[19].mxu0  ;;  %v1544_v35 = vpop.f32.mrb[19].mxu1  ;;  %v1577_v37 = vmax.f32 %v2309_v28, 0.0  ;;  %v1579_v38 = vmax.f32 %v2325_v29, 0.0 }
 0x23d   :  { %v2312_v44 = vadd.f32 %v1398_v59, %v2993_v24  ;;  %v2328_v36 = vadd.f32 %v1544_v35, %v2997_v25  ;;  %v1578_v46 = vmax.f32 %v2310_v31, 0.0  ;;  %v1580_v47 = vmax.f32 %v2326_v56, 0.0 }
 0x23e   :  { %v1581_v39 = vmax.f32 %v2311_v43, 0.0  ;;  %v1583_v42 = vmax.f32 %v2327_v40, 0.0 }
 0x23f   :  { %v1582_v48 = vmax.f32 %v2312_v44, 0.0  ;;  %v1584_v45 = vmax.f32 %v2328_v36, 0.0 }
 0x240   :  { %v1609_v49 = vpack.c.bf16 %v1581_v39, %v1577_v37  ;;  %v1611_v50 = vpack.c.bf16 %v1583_v42, %v1579_v38 }
 0x241   :  { %v1610_v52 = vpack.c.bf16 %v1582_v48, %v1578_v46  ;;  %v1612_v53 = vpack.c.bf16 %v1584_v45, %v1580_v47  ;;  %v1402_v54 = vpop.f32.mrb[20].mxu0  ;;  %v1548_v55 = vpop.f32.mrb[20].mxu1 }
 0x242   :  { %v2313_v58 = vadd.f32 %v1402_v54, %v2985_v6  ;;  %v2329_v60 = vadd.f32 %v1548_v55, %v2989_v23  ;;  %v1404_v61 = vpop.f32.mrb[21].mxu0  ;;  %v1550_v63 = vpop.f32.mrb[21].mxu1 }
 0x243   :  { %v2314_v1 = vadd.f32 %v1404_v61, %v2993_v24  ;;  %v2330_v3 = vadd.f32 %v1550_v63, %v2997_v25  ;;  %v1406_v4 = vpop.f32.mrb[22].mxu0  ;;  %v1552_v5 = vpop.f32.mrb[22].mxu1  ;;  %1920 = vmatprep.mubr.bf16.mxu0 %v1610_v52  ;;  %1985 = vmatprep.mubr.bf16.mxu1 %v1612_v53 }
 0x244   :  { %v2315_v7 = vadd.f32 %v1406_v4, %v2985_v6  ;;  %v2331_v8 = vadd.f32 %v1552_v5, %v2989_v23  ;;  %v1408_v51 = vpop.f32.mrb[23].mxu0  ;;  %v1554_v32 = vpop.f32.mrb[23].mxu1  ;;  %1921 = vmatmul.mubr.bf16.vlgmr.msra.gmra.mrb[32].mxu0 %v1609_v49  ;;  %1986 = vmatmul.mubr.bf16.vlgmr.msra.gmra.mrb[32].mxu1 %v1611_v50  ;;  %v1585_v12 = vmax.f32 %v2313_v58, 0.0  ;;  %v1587_v13 = vmax.f32 %v2329_v60, 0.0 }
 0x245   :  { %v2316_v10 = vadd.f32 %v1408_v51, %v2993_v24  ;;  %v2332_v11 = vadd.f32 %v1554_v32, %v2997_v25  ;;  %v1586_v27 = vmax.f32 %v2314_v1, 0.0  ;;  %v1588_v2 = vmax.f32 %v2330_v3, 0.0 }
 0x246   :  { %v1589_v0 = vmax.f32 %v2315_v7, 0.0  ;;  %v1591_v14 = vmax.f32 %v2331_v8, 0.0 }
 0x247   :  { %v1590_v15 = vmax.f32 %v2316_v10, 0.0  ;;  %v1592_v16 = vmax.f32 %v2332_v11, 0.0 }
 0x248   :  { %v1613_v17 = vpack.c.bf16 %v1589_v0, %v1585_v12  ;;  %v1615_v18 = vpack.c.bf16 %v1591_v14, %v1587_v13 }
 0x249   :  { %v1614_v62 = vpack.c.bf16 %v1590_v15, %v1586_v27  ;;  %v1616_v19 = vpack.c.bf16 %v1592_v16, %v1588_v2  ;;  %v1412_v20 = vpop.f32.mrb[24].mxu0  ;;  %v1558_v57 = vpop.f32.mrb[24].mxu1 }
 0x24a   :  { %v2317_v22 = vadd.f32 %v1412_v20, %v2985_v6  ;;  %v2333_v21 = vadd.f32 %v1558_v57, %v2989_v23  ;;  %v1414_v9 = vpop.f32.mrb[25].mxu0  ;;  %v1560_v26 = vpop.f32.mrb[25].mxu1 }
 0x24b   :  { %v2318_v28 = vadd.f32 %v1414_v9, %v2993_v24  ;;  %v2334_v29 = vadd.f32 %v1560_v26, %v2997_v25  ;;  %v1416_v41 = vpop.f32.mrb[26].mxu0  ;;  %v1562_v30 = vpop.f32.mrb[26].mxu1  ;;  %1928 = vmatprep.mubr.bf16.mxu0 %v1614_v62  ;;  %1993 = vmatprep.mubr.bf16.mxu1 %v1616_v19 }
 0x24c   :  { %v2319_v31 = vadd.f32 %v1416_v41, %v2985_v6  ;;  %v2335_v56 = vadd.f32 %v1562_v30, %v2989_v23  ;;  %v1418_v33 = vpop.f32.mrb[27].mxu0  ;;  %v1564_v34 = vpop.f32.mrb[27].mxu1  ;;  %1929 = vmatmul.mubr.bf16.gmra.mrb[36].mxu0 %v1613_v17  ;;  %1994 = vmatmul.mubr.bf16.gmra.mrb[36].mxu1 %v1615_v18  ;;  %v1593_v59 = vmax.f32 %v2317_v22, 0.0  ;;  %v1595_v35 = vmax.f32 %v2333_v21, 0.0 }
 0x24d   :  { %v2320_v43 = vadd.f32 %v1418_v33, %v2993_v24  ;;  %v2336_v40 = vadd.f32 %v1564_v34, %v2997_v25  ;;  %v1594_v37 = vmax.f32 %v2318_v28, 0.0  ;;  %v1596_v38 = vmax.f32 %v2334_v29, 0.0 }
 0x24e   :  { %v1597_v44 = vmax.f32 %v2319_v31, 0.0  ;;  %v1599_v36 = vmax.f32 %v2335_v56, 0.0 }
 0x24f   :  { %v1598_v39 = vmax.f32 %v2320_v43, 0.0  ;;  %v1600_v42 = vmax.f32 %v2336_v40, 0.0 }
 0x250   :  { %v1617_v46 = vpack.c.bf16 %v1597_v44, %v1593_v59  ;;  %v1619_v47 = vpack.c.bf16 %v1599_v36, %v1595_v35 }
 0x251   :  { %v1618_v48 = vpack.c.bf16 %v1598_v39, %v1594_v37  ;;  %v1620_v45 = vpack.c.bf16 %v1600_v42, %v1596_v38  ;;  %v1422_v49 = vpop.f32.mrb[28].mxu0  ;;  %v1568_v50 = vpop.f32.mrb[28].mxu1 }
 0x252   :  { %v2321_v52 = vadd.f32 %v1422_v49, %v2985_v6  ;;  %v2337_v53 = vadd.f32 %v1568_v50, %v2989_v23  ;;  %v1424_v54 = vpop.f32.mrb[29].mxu0  ;;  %v1570_v55 = vpop.f32.mrb[29].mxu1 }
 0x253   :  { %v2322_v58 = vadd.f32 %v1424_v54, %v2993_v24  ;;  %v2338_v60 = vadd.f32 %v1570_v55, %v2997_v25  ;;  %v1426_v61 = vpop.f32.mrb[30].mxu0  ;;  %v1572_v63 = vpop.f32.mrb[30].mxu1  ;;  %1936 = vmatprep.mubr.bf16.mxu0 %v1618_v48  ;;  %2001 = vmatprep.mubr.bf16.mxu1 %v1620_v45 }
 0x254   :  { %v2323_v1 = vadd.f32 %v1426_v61, %v2985_v6  ;;  %v2339_v3 = vadd.f32 %v1572_v63, %v2989_v23  ;;  %v1428_v4 = vpop.f32.mrb[31].mxu0  ;;  %v1574_v5 = vpop.f32.mrb[31].mxu1  ;;  %1937 = vmatmul.mubr.bf16.gmra.mrb[40].mxu0 %v1617_v46  ;;  %2002 = vmatmul.mubr.bf16.gmra.mrb[40].mxu1 %v1619_v47  ;;  %v1601_v51 = vmax.f32 %v2321_v52, 0.0  ;;  %v1603_v32 = vmax.f32 %v2337_v53, 0.0 }
 0x255   :  { %v2324_v7 = vadd.f32 %v1428_v4, %v2993_v24  ;;  %v2340_v8 = vadd.f32 %v1574_v5, %v2997_v25  ;;  %v1602_v12 = vmax.f32 %v2322_v58, 0.0  ;;  %v1604_v13 = vmax.f32 %v2338_v60, 0.0  ;;  %v3034_v25 = vld [vmem:[%s3074_s6] ss:$0 sm:$0xff] }
 0x256   :  { %v1605_v10 = vmax.f32 %v2323_v1, 0.0  ;;  %v1607_v11 = vmax.f32 %v2339_v3, 0.0 }
 0x257   :  { %v1606_v0 = vmax.f32 %v2324_v7, 0.0  ;;  %v1608_v14 = vmax.f32 %v2340_v8, 0.0 }
 0x258   :  { %v1621_v27 = vpack.c.bf16 %v1605_v10, %v1601_v51  ;;  %v1623_v6 = vpack.c.bf16 %v1607_v11, %v1603_v32 }
 0x259   :  { %v1622_v2 = vpack.c.bf16 %v1606_v0, %v1602_v12  ;;  %v1624_v23 = vpack.c.bf16 %v1608_v14, %v1604_v13 }
 0x25b   :  { %1944 = vmatprep.mubr.bf16.mxu0 %v1622_v2  ;;  %2009 = vmatprep.mubr.bf16.mxu1 %v1624_v23 }
 0x25c   :  { %1945 = vmatmul.mubr.bf16.gmra.mrb[44].mxu0 %v1621_v27  ;;  %2010 = vmatmul.mubr.bf16.gmra.mrb[44].mxu1 %v1623_v6 }
 0x317   :  { %v2245_v15 = vpop.f32.mrb[32].mxu0  ;;  %v2285_v24 = vpop.f32.mrb[32].mxu1 }
 0x318   :  { %v2246_v16 = vpop.f32.mrb[33].mxu0  ;;  %v2286_v17 = vpop.f32.mrb[33].mxu1 }
 0x319   :  { %v2247_v18 = vadd.f32 %v2246_v16, %v2245_v15  ;;  %v2287_v62 = vadd.f32 %v2286_v17, %v2285_v24  ;;  %v2248_v19 = vpop.f32.mrb[34].mxu0  ;;  %v2288_v20 = vpop.f32.mrb[34].mxu1 }
 0x31a   :  { %v2249_v57 = vpop.f32.mrb[35].mxu0  ;;  %v2289_v22 = vpop.f32.mrb[35].mxu1 }
 0x31b   :  { %v1923_v21 = vadd.f32 %v2247_v18, %v3034_v25  ;;  %v2250_v9 = vadd.f32 %v2249_v57, %v2248_v19  ;;  %v2290_v26 = vadd.f32 %v2289_v22, %v2288_v20 }
 0x31d   :  { %v1988_v28 = vadd.f32 %v2287_v62, %v1923_v21  ;;  %v1926_v29 = vadd.f32 %v2250_v9, %v3034_v25 }
 0x31f   :  { %2018 = vst [vmem:[%s3075_s7] sm:$0xff] %v1988_v28  ;;  %v1991_v41 = vadd.f32 %v2290_v26, %v1926_v29  ;;  %v2251_v30 = vpop.f32.mrb[36].mxu0  ;;  %v2291_v31 = vpop.f32.mrb[36].mxu1 }
 0x320   :  { %v2252_v56 = vpop.f32.mrb[37].mxu0  ;;  %v2292_v33 = vpop.f32.mrb[37].mxu1 }
 0x321   :  { %2019 = vst [vmem:[%s3075_s7 + $0x8] sm:$0xff] %v1991_v41  ;;  %v2253_v34 = vadd.f32 %v2252_v56, %v2251_v30  ;;  %v2293_v43 = vadd.f32 %v2292_v33, %v2291_v31  ;;  %v2254_v40 = vpop.f32.mrb[38].mxu0  ;;  %v2294_v59 = vpop.f32.mrb[38].mxu1 }
 0x322   :  { %v2255_v35 = vpop.f32.mrb[39].mxu0  ;;  %v2295_v44 = vpop.f32.mrb[39].mxu1 }
 0x323   :  { %v1931_v36 = vadd.f32 %v2253_v34, %v3034_v25  ;;  %v2256_v37 = vadd.f32 %v2255_v35, %v2254_v40  ;;  %v2296_v38 = vadd.f32 %v2295_v44, %v2294_v59 }
 0x325   :  { %v1996_v39 = vadd.f32 %v2293_v43, %v1931_v36  ;;  %v1934_v42 = vadd.f32 %v2256_v37, %v3034_v25 }
 0x327   :  { %2020 = vst [vmem:[%s3075_s7 + $0x10] sm:$0xff] %v1996_v39  ;;  %v1999_v46 = vadd.f32 %v2296_v38, %v1934_v42  ;;  %v2257_v47 = vpop.f32.mrb[40].mxu0  ;;  %v2297_v48 = vpop.f32.mrb[40].mxu1 }
 0x328   :  { %v2258_v45 = vpop.f32.mrb[41].mxu0  ;;  %v2298_v49 = vpop.f32.mrb[41].mxu1 }
 0x329   :  { %2021 = vst [vmem:[%s3075_s7 + $0x18] sm:$0xff] %v1999_v46  ;;  %v2259_v50 = vadd.f32 %v2258_v45, %v2257_v47  ;;  %v2299_v52 = vadd.f32 %v2298_v49, %v2297_v48  ;;  %v2260_v53 = vpop.f32.mrb[42].mxu0  ;;  %v2300_v54 = vpop.f32.mrb[42].mxu1 }
 0x32a   :  { %v2261_v55 = vpop.f32.mrb[43].mxu0  ;;  %v2301_v58 = vpop.f32.mrb[43].mxu1 }
 0x32b   :  { %v1939_v60 = vadd.f32 %v2259_v50, %v3034_v25  ;;  %v2262_v61 = vadd.f32 %v2261_v55, %v2260_v53  ;;  %v2302_v63 = vadd.f32 %v2301_v58, %v2300_v54 }
 0x32d   :  { %v2004_v1 = vadd.f32 %v2299_v52, %v1939_v60  ;;  %v1942_v3 = vadd.f32 %v2262_v61, %v3034_v25 }
 0x32f   :  { %2022 = vst [vmem:[%s3075_s7 + $0x20] sm:$0xff] %v2004_v1  ;;  %v2007_v4 = vadd.f32 %v2302_v63, %v1942_v3  ;;  %v2263_v5 = vpop.f32.mrb[44].mxu0  ;;  %v2303_v7 = vpop.f32.mrb[44].mxu1 }
 0x330   :  { %v2264_v8 = vpop.f32.mrb[45].mxu0  ;;  %v2304_v51 = vpop.f32.mrb[45].mxu1 }
 0x331   :  { %2023 = vst [vmem:[%s3075_s7 + $0x28] sm:$0xff] %v2007_v4  ;;  %v2265_v32 = vadd.f32 %v2264_v8, %v2263_v5  ;;  %v2305_v10 = vadd.f32 %v2304_v51, %v2303_v7  ;;  %v2266_v11 = vpop.f32.mrb[46].mxu0  ;;  %v2306_v12 = vpop.f32.mrb[46].mxu1 }
 0x332   :  { %v2267_v13 = vpop.f32.mrb[47].mxu0  ;;  %v2307_v0 = vpop.f32.mrb[47].mxu1 }
 0x333   :  { %v1947_v14 = vadd.f32 %v2265_v32, %v3034_v25  ;;  %v2268_v27 = vadd.f32 %v2267_v13, %v2266_v11  ;;  %v2308_v6 = vadd.f32 %v2307_v0, %v2306_v12 }
 0x335   :  { %v2012_v2 = vadd.f32 %v2305_v10, %v1947_v14  ;;  %v1950_v23 = vadd.f32 %v2268_v27, %v3034_v25 }
 0x337   :  { %2024 = vst [vmem:[%s3075_s7 + $0x30] sm:$0xff] %v2012_v2  ;;  %v2015_v15 = vadd.f32 %v2308_v6, %v1950_v23 }
 0x339   :  { %2025 = vst [vmem:[%s3075_s7 + $0x38] sm:$0xff] %v2015_v15 }
 0x33a   :  { %2030 = vsyncpa [#allocation3], 1 }
 0x33b   :  { %2031 = vsyncpa [#allocation5], 1 }

</bundles_post_ra>
